<compile_context>
chip_gen: v5e
topology: v5e:2x2
jax: 0.10.0
libtpu: 0.0.40
codegen_flags: <defaults>
</compile_context>

<pallas_src>
import jax
import jax.numpy as jnp
from jax import lax
from jax.experimental import pallas as pl
from jax.experimental.pallas import tpu as pltpu

# ----------------------------- problem sizes --------------------------------
B = 2            # batch (number of agents)
C = 4            # observation channels
H = 16           # spatial height
W = 16           # spatial width
D = C * H * W    # flattened obs dim = 1024
HIDDEN = 32      # policy trunk width
NUM_ACTIONS = 8
OUT_LANES = 128              # single lane-dense output slab width
VALUE_LANE = NUM_ACTIONS     # lane 8 holds the value estimate
ACTION_LANE = NUM_ACTIONS + 1  # lane 9 holds the greedy action (as f32)
B1_OFF = 64                  # lanes [64, 64+HIDDEN) of the bias row hold the trunk bias


# ------------------------------- kernel -------------------------------------
def _policy_head_kernel(x_ref, w1_ref, wh_ref, b_ref, out_ref):
    """Fused policy head over one batch tile.

    h   = tanh(x @ W1 + b1)          # bf16 MXU matmul, f32 accumulate
    out = h @ Wheads + bheads        # bf16 MXU matmul; logits lanes 0..7, value lane 8
    out[:, 9] = argmax(out[:, :8])   # greedy action, encoded as f32
    """
    tb = x_ref.shape[0]
    x = x_ref[...].astype(jnp.bfloat16)            # in-kernel cast (VPU, free slot)
    b = b_ref[...]                                 # [1, 128] f32 packed bias row
    b1 = b[:, B1_OFF:B1_OFF + HIDDEN]              # [1, 32] trunk bias

    # Trunk matmul: K = 1024 contraction, N = 32 (true width, no lane padding).
    h = jnp.tanh(
        jnp.dot(x, w1_ref[...], preferred_element_type=jnp.float32) + b1
    )                                              # [tb, 32] f32

    # Fused heads: logits + value in one 128-lane slab (bf16 MXU, f32 accumulate).
    # Adding the whole bias row also deposits the trunk-bias values into unused
    # lanes 64..95 of `out`; those lanes are never read, so this is harmless.
    out = jnp.dot(h.astype(jnp.bfloat16), wh_ref[...],
                  preferred_element_type=jnp.float32) + b   # [tb, 128] f32

    # Greedy action over the first NUM_ACTIONS lanes (first-max tie-break),
    # built from max/min lane reductions only (XLU); stored in lane 9.
    lane = lax.broadcasted_iota(jnp.int32, (tb, OUT_LANES), 1)
    neg = jnp.float32(-1e30)
    masked = jnp.where(lane < NUM_ACTIONS, out, neg)
    m = jnp.max(masked, axis=-1, keepdims=True)                       # [tb, 1]
    idx = jnp.min(jnp.where(masked == m, lane, OUT_LANES),
                  axis=-1, keepdims=True)                             # [tb, 1] int32
    out = jnp.where(lane == ACTION_LANE, idx.astype(jnp.float32), out)

    out_ref[...] = out                              # full-tile unmasked store


def policy_head(x, w1, wh, bias):
    """x: [rows, D] f32 flattened observations. Returns [rows, 128] f32 slab."""
    rows, d = x.shape
    # Small batches use 8-row tiles (minimum sublane tile); large batches use
    # 128-row tiles to amortize per-grid-step overhead.
    tile_b = 128 if rows >= 128 else 8
    rows_pad = ((rows + tile_b - 1) // tile_b) * tile_b
    if rows_pad != rows:
        x = jnp.pad(x, ((0, rows_pad - rows), (0, 0)))
    nb = rows_pad // tile_b

    out = pl.pallas_call(
        _policy_head_kernel,
        out_shape=jax.ShapeDtypeStruct((rows_pad, OUT_LANES), jnp.float32),
        grid=(nb,),
        in_specs=[
            # obs tiles pipeline across the batch grid axis
            pl.BlockSpec((tile_b, d), lambda i: (i, 0)),
            # weights / bias: constant block index -> VMEM-resident across steps
            pl.BlockSpec((d, HIDDEN), lambda i: (0, 0)),
            pl.BlockSpec((HIDDEN, OUT_LANES), lambda i: (0, 0)),
            pl.BlockSpec((1, OUT_LANES), lambda i: (0, 0)),
        ],
        out_specs=pl.BlockSpec((tile_b, OUT_LANES), lambda i: (i, 0)),
        compiler_params=pltpu.CompilerParams(
            dimension_semantics=("parallel",)),   # megacore-shard batch tiles (v7x)
    )(x, w1, wh, bias)
    return out[:rows]


# --------------------------- params & packing --------------------------------
def init_params(key):
    """Deterministic synthetic parameters (stand-in for LLMAgent internals)."""
    k1, k2, k3, k4, k5, k6 = jax.random.split(key, 6)
    w1 = jax.random.normal(k1, (D, HIDDEN), jnp.float32) * (1.0 / jnp.sqrt(D))
    b1 = jax.random.normal(k4, (HIDDEN,), jnp.float32) * 0.1
    w2 = jax.random.normal(k2, (HIDDEN, NUM_ACTIONS), jnp.float32) * (1.0 / jnp.sqrt(HIDDEN))
    b2 = jax.random.normal(k5, (NUM_ACTIONS,), jnp.float32) * 0.1
    wv = jax.random.normal(k3, (HIDDEN, 1), jnp.float32) * (1.0 / jnp.sqrt(HIDDEN))
    bv = jax.random.normal(k6, (1,), jnp.float32) * 0.1
    return (w1, b1, w2, b2, wv, bv)


def pack_params(params):
    """One-time (wrapper-side) packing into the 4 kernel operands."""
    w1, b1, w2, b2, wv, bv = params
    # Trunk weight: true shape, bf16 (no lane padding).
    w1_bf = w1.astype(jnp.bfloat16)                                   # [D, 32]
    # Fused head slab: logits columns 0..7, value column 8, rest zero; bf16.
    wh = (jnp.zeros((HIDDEN, OUT_LANES), jnp.float32)
          .at[:, :NUM_ACTIONS].set(w2)
          .at[:, VALUE_LANE].set(wv[:, 0])).astype(jnp.bfloat16)      # [32, 128]
    # Single packed bias row: lanes 0..7 = b2, lane 8 = bv, lanes 64..95 = b1.
    bias = (jnp.zeros((1, OUT_LANES), jnp.float32)
            .at[0, :NUM_ACTIONS].set(b2)
            .at[0, VALUE_LANE].set(bv[0])
            .at[0, B1_OFF:B1_OFF + HIDDEN].set(b1))
    return (w1_bf, wh, bias)


# --------------------------- adapter wrapper ---------------------------------
def llm_policy_adapter_forward(obs, state, packed):
    """Mirrors LLMPolicyAdapter.forward(obs, state): returns (output, state).

    obs: [B, C, H, W] float32 (NCHW, same as the PyTorch env observation).
    state: passed through unchanged (the adapter only delegates it).
    """
    # TODO(synk): the real LLMAgent prompts an external LLM (tokenization + API
    # round-trip) to pick actions; that call has no Pallas equivalent.
    w1, wh, bias = packed
    rows = obs.shape[0]
    x = obs.reshape(rows, -1)                      # torch.flatten-equivalent NCHW flatten
    out = policy_head(x, w1, wh, bias)             # [rows, 128] f32
    logits = out[:, :NUM_ACTIONS]
    value = out[:, VALUE_LANE:VALUE_LANE + 1]
    actions = out[:, ACTION_LANE].astype(jnp.int32)  # greedy action, computed in-kernel
    return (actions, logits, value), state


def reference_forward(obs, params):
    """Pure-JAX f32 reference of the policy head."""
    w1, b1, w2, b2, wv, bv = params
    rows = obs.shape[0]
    x = obs.reshape(rows, -1)
    h = jnp.tanh(jnp.dot(x, w1, precision=lax.Precision.HIGHEST) + b1[None, :])
    logits = jnp.dot(h, w2, precision=lax.Precision.HIGHEST) + b2[None, :]
    value = jnp.dot(h, wv, precision=lax.Precision.HIGHEST) + bv[None, :]
    return logits, value


if __name__ == "__main__":
    key = jax.random.PRNGKey(0)
    k_obs, k_par = jax.random.split(key)
    obs = jax.random.normal(k_obs, (B, C, H, W), jnp.float32)
    state = None
    params = init_params(k_par)
    packed = pack_params(params)

    (actions, logits, value), state_out = llm_policy_adapter_forward(obs, state, packed)
    jax.block_until_ready((actions, logits, value))

    ref_logits, ref_value = reference_forward(obs, params)
    # bf16 matmul inputs (f32 accumulate) -> small, bounded deviation from the f32 ref.
    assert jnp.allclose(logits, ref_logits, atol=1e-1), "logits mismatch"
    assert jnp.allclose(value, ref_value, atol=1e-1), "value mismatch"
    # In-kernel greedy action must agree with argmax of the kernel's own logits.
    assert jnp.array_equal(actions, jnp.argmax(logits, axis=-1).astype(jnp.int32)), "action mismatch"
    assert actions.shape == (B,)
    assert state_out is state
    print("KERNEL_OK")
</pallas_src>

<mosaic_0001>
module attributes {stable_mosaic.version = 11 : i64} {
  func.func @_policy_head_kernel(%arg0: i32, %arg1: memref<8x1024xf32, #tpu.memory_space<vmem>>, %arg2: memref<1024x32xbf16, #tpu.memory_space<vmem>>, %arg3: memref<32x128xbf16, #tpu.memory_space<vmem>>, %arg4: memref<1x128xf32, #tpu.memory_space<vmem>>, %arg5: memref<8x128xf32, #tpu.memory_space<vmem>>) attributes {dimension_semantics = [#tpu.dimension_semantics<parallel>], iteration_bounds = array<i64: 1>, scalar_prefetch = 0 : i64, scratch_operands = 0 : i64, tpu.core_type = #tpu.core_type<tc>, window_params = [{transform_indices = @transform_0, window_bounds = array<i64: 8, 1024>}, {pipeline_mode = #tpu.pipeline_mode<synchronous>, transform_indices = @transform_1, window_bounds = array<i64: 1024, 32>}, {pipeline_mode = #tpu.pipeline_mode<synchronous>, transform_indices = @transform_2, window_bounds = array<i64: 32, 128>}, {pipeline_mode = #tpu.pipeline_mode<synchronous>, transform_indices = @transform_3, window_bounds = array<i64: 1, 128>}, {transform_indices = @transform_4, window_bounds = array<i64: 8, 128>}]} {
    %c0 = arith.constant 0 : index
    %c0_0 = arith.constant 0 : index
    %0 = vector.load %arg1[%c0, %c0_0] : memref<8x1024xf32, #tpu.memory_space<vmem>>, vector<8x1024xf32>
    %1 = arith.truncf %0 : vector<8x1024xf32> to vector<8x1024xbf16>
    %c0_1 = arith.constant 0 : index
    %c0_2 = arith.constant 0 : index
    %2 = vector.load %arg4[%c0_1, %c0_2] : memref<1x128xf32, #tpu.memory_space<vmem>>, vector<1x128xf32>
    %3 = vector.extract_strided_slice %2 {offsets = [0, 64], sizes = [1, 32], strides = [1, 1]} : vector<1x128xf32> to vector<1x32xf32>
    %c0_3 = arith.constant 0 : index
    %c0_4 = arith.constant 0 : index
    %4 = vector.load %arg2[%c0_3, %c0_4] : memref<1024x32xbf16, #tpu.memory_space<vmem>>, vector<1024x32xbf16>
    %cst = arith.constant dense<0.000000e+00> : vector<8x32xf32>
    %5 = tpu.matmul %1, %4, %cst {dimension_numbers = #tpu.dot_dimension_numbers<[1], [0], [0], [1], [0, 0, 1, 1], [], []>} : vector<8x1024xbf16>, vector<1024x32xbf16>, vector<8x32xf32> -> vector<8x32xf32>
    %6 = vector.broadcast %3 : vector<1x32xf32> to vector<8x32xf32>
    %7 = arith.addf %5, %6 : vector<8x32xf32>
    %8 = math.tanh %7 : vector<8x32xf32>
    %9 = arith.truncf %8 : vector<8x32xf32> to vector<8x32xbf16>
    %c0_5 = arith.constant 0 : index
    %c0_6 = arith.constant 0 : index
    %10 = vector.load %arg3[%c0_5, %c0_6] : memref<32x128xbf16, #tpu.memory_space<vmem>>, vector<32x128xbf16>
    %cst_7 = arith.constant dense<0.000000e+00> : vector<8x128xf32>
    %11 = tpu.matmul %9, %10, %cst_7 {dimension_numbers = #tpu.dot_dimension_numbers<[1], [0], [0], [1], [0, 0, 1, 1], [], []>} : vector<8x32xbf16>, vector<32x128xbf16>, vector<8x128xf32> -> vector<8x128xf32>
    %12 = vector.broadcast %2 : vector<1x128xf32> to vector<8x128xf32>
    %13 = arith.addf %11, %12 : vector<8x128xf32>
    %14 = tpu.iota {dimensions = array<i32: 1>} : vector<8x128xi32>
    %c8_i32 = arith.constant 8 : i32
    %15 = vector.broadcast %c8_i32 : i32 to vector<8x128xi32>
    %16 = arith.cmpi slt, %14, %15 : vector<8x128xi32>
    %cst_8 = arith.constant -1.000000e+30 : f32
    %17 = vector.broadcast %cst_8 : f32 to vector<8x128xf32>
    %18 = arith.select %16, %13, %17 : vector<8x128xi1>, vector<8x128xf32>
    %cst_9 = arith.constant dense<0xFF800000> : vector<8xf32>
    %19 = vector.multi_reduction <maximumf>, %18, %cst_9 [1] : vector<8x128xf32> to vector<8xf32>
    %20 = vector.shape_cast %19 : vector<8xf32> to vector<8x1xf32>
    %21 = vector.broadcast %20 : vector<8x1xf32> to vector<8x128xf32>
    %22 = arith.cmpf oeq, %18, %21 : vector<8x128xf32>
    %c128_i32 = arith.constant 128 : i32
    %23 = vector.broadcast %c128_i32 : i32 to vector<8x128xi32>
    %24 = arith.select %22, %14, %23 : vector<8x128xi1>, vector<8x128xi32>
    %cst_10 = arith.constant dense<2147483647> : vector<8xi32>
    %25 = vector.multi_reduction <minsi>, %24, %cst_10 [1] : vector<8x128xi32> to vector<8xi32>
    %26 = vector.shape_cast %25 : vector<8xi32> to vector<8x1xi32>
    %c9_i32 = arith.constant 9 : i32
    %27 = vector.broadcast %c9_i32 : i32 to vector<8x128xi32>
    %28 = arith.cmpi eq, %14, %27 : vector<8x128xi32>
    %29 = arith.sitofp %26 : vector<8x1xi32> to vector<8x1xf32>
    %30 = vector.shape_cast %29 : vector<8x1xf32> to vector<8x1xf32>
    %31 = vector.broadcast %30 : vector<8x1xf32> to vector<8x128xf32>
    %32 = arith.select %28, %31, %13 : vector<8x128xi1>, vector<8x128xf32>
    %c0_11 = arith.constant 0 : index
    %c0_12 = arith.constant 0 : index
    %33 = vector.load %arg5[%c0_11, %c0_12] : memref<8x128xf32, #tpu.memory_space<vmem>>, vector<8x128xf32>
    tpu.vector_store %arg5[%c0_11, %c0_12], %32 {strides = array<i32>} : memref<8x128xf32, #tpu.memory_space<vmem>>, vector<8x128xf32>,
    return
  }
  func.func @transform_0(%arg0: i32) -> (i32, i32) {
    %c0_i32 = arith.constant 0 : i32
    %c0_i32_0 = arith.constant 0 : i32
    return %arg0, %c0_i32 : i32, i32
  }
  func.func @transform_1(%arg0: i32) -> (i32, i32) {
    %c0_i32 = arith.constant 0 : i32
    %c0_i32_0 = arith.constant 0 : i32
    %c0_i32_1 = arith.constant 0 : i32
    return %c0_i32, %c0_i32_0 : i32, i32
  }
  func.func @transform_2(%arg0: i32) -> (i32, i32) {
    %c0_i32 = arith.constant 0 : i32
    %c0_i32_0 = arith.constant 0 : i32
    %c0_i32_1 = arith.constant 0 : i32
    return %c0_i32, %c0_i32_0 : i32, i32
  }
  func.func @transform_3(%arg0: i32) -> (i32, i32) {
    %c0_i32 = arith.constant 0 : i32
    %c0_i32_0 = arith.constant 0 : i32
    %c0_i32_1 = arith.constant 0 : i32
    return %c0_i32, %c0_i32_0 : i32, i32
  }
  func.func @transform_4(%arg0: i32) -> (i32, i32) {
    %c0_i32 = arith.constant 0 : i32
    %c0_i32_0 = arith.constant 0 : i32
    return %arg0, %c0_i32 : i32, i32
  }
}

</mosaic_0001>

<bundles_post_ra>
// kernel: tpu_custom_call.1
= control target key start
LH: loop header
LB: loop body
LE: loop exit
PB: predicated region body
PF: predicated region fallthrough
CT: control target
= control target key end

     0   :  { %s1356_s0 = inlined_call_operand.vmem [shape: f32[8,1024], index: 0, kind: input, shape index: {}]   ;;  %s1357_s1 = inlined_call_operand.vmem [shape: bf16[1024,32], index: 1, kind: input, shape index: {}]   ;;  %s1358_s2 = inlined_call_operand.vmem [shape: bf16[32,128], index: 2, kind: input, shape index: {}]   ;;  %s1359_s3 = inlined_call_operand.vmem [shape: f32[1,128], index: 3, kind: input, shape index: {}]   ;;  %s1360_s4 = inlined_call_operand.hbm [shape: f32[8,128], index: 4, kind: output, shape index: {}]  }
   0x1   :  { %v1007_v0 = vld [vmem:[%s1357_s1 + $0x38] sm:$0xff]  ;;  %v1006_v4 = vld [vmem:[%s1357_s1 + $0x30] sm:$0xff]  ;;  %v1005_v8 = vld [vmem:[%s1357_s1 + $0x28] sm:$0xff] }
   0x2   :  { %v1015_v1 = vld [vmem:[%s1357_s1 + $0x78] sm:$0xff]  ;;  %553 = vmatpush.bf16.msra.mxu0 %v1007_v0  ;;  %v1014_v5 = vld [vmem:[%s1357_s1 + $0x70] sm:$0xff]  ;;  %v1013_v9 = vld [vmem:[%s1357_s1 + $0x68] sm:$0xff] }
   0x3   :  { %v1023_v2 = vld [vmem:[%s1357_s1 + $0xb8] sm:$0xff]  ;;  %566 = vmatpush.bf16.msra.mxu1 %v1015_v1  ;;  %v1022_v6 = vld [vmem:[%s1357_s1 + $0xb0] sm:$0xff]  ;;  %v1021_v10 = vld [vmem:[%s1357_s1 + $0xa8] sm:$0xff] }
   0x4   :  { %v1031_v3 = vld [vmem:[%s1357_s1 + $0xf8] sm:$0xff]  ;;  %579 = vmatpush.bf16.msra.mxu2 %v1023_v2  ;;  %v1030_v7 = vld [vmem:[%s1357_s1 + $0xf0] sm:$0xff]  ;;  %v1029_v11 = vld [vmem:[%s1357_s1 + $0xe8] sm:$0xff] }
   0x5   :  { %592 = vmatpush.bf16.msra.mxu3 %v1031_v3  ;;  %v1004_v12 = vld [vmem:[%s1357_s1 + $0x20] sm:$0xff]  ;;  %v1003_v16 = vld [vmem:[%s1357_s1 + $0x18] sm:$0xff]  ;;  %v1002_v20 = vld [vmem:[%s1357_s1 + $0x10] sm:$0xff] }
   0x6   :  { %554 = vmatpush.bf16.msra.mxu0 %v1006_v4  ;;  %v1012_v13 = vld [vmem:[%s1357_s1 + $0x60] sm:$0xff]  ;;  %v1011_v17 = vld [vmem:[%s1357_s1 + $0x58] sm:$0xff]  ;;  %v1010_v21 = vld [vmem:[%s1357_s1 + $0x50] sm:$0xff] }
   0x7   :  { %567 = vmatpush.bf16.msra.mxu1 %v1014_v5  ;;  %v1020_v14 = vld [vmem:[%s1357_s1 + $0xa0] sm:$0xff]  ;;  %v1019_v18 = vld [vmem:[%s1357_s1 + $0x98] sm:$0xff]  ;;  %v1018_v22 = vld [vmem:[%s1357_s1 + $0x90] sm:$0xff] }
   0x8   :  { %580 = vmatpush.bf16.msra.mxu2 %v1022_v6  ;;  %v1028_v15 = vld [vmem:[%s1357_s1 + $0xe0] sm:$0xff]  ;;  %v1027_v19 = vld [vmem:[%s1357_s1 + $0xd8] sm:$0xff]  ;;  %v1026_v23 = vld [vmem:[%s1357_s1 + $0xd0] sm:$0xff] }
   0x9   :  { %593 = vmatpush.bf16.msra.mxu3 %v1030_v7 }
   0xa   :  { %555 = vmatpush.bf16.msra.mxu0 %v1005_v8 }
   0xb   :  { %568 = vmatpush.bf16.msra.mxu1 %v1013_v9 }
   0xc   :  { %581 = vmatpush.bf16.msra.mxu2 %v1021_v10 }
   0xd   :  { %594 = vmatpush.bf16.msra.mxu3 %v1029_v11 }
   0xe   :  { %556 = vmatpush.bf16.msra.mxu0 %v1004_v12 }
   0xf   :  { %569 = vmatpush.bf16.msra.mxu1 %v1012_v13 }
  0x10   :  { %582 = vmatpush.bf16.msra.mxu2 %v1020_v14 }
  0x11   :  { %595 = vmatpush.bf16.msra.mxu3 %v1028_v15 }
  0x12   :  { %557 = vmatpush.bf16.msra.mxu0 %v1003_v16 }
  0x13   :  { %570 = vmatpush.bf16.msra.mxu1 %v1011_v17 }
  0x14   :  { %583 = vmatpush.bf16.msra.mxu2 %v1019_v18 }
  0x15   :  { %596 = vmatpush.bf16.msra.mxu3 %v1027_v19 }
  0x16   :  { %9 = vsyncpa [#allocation3], 0  ;;  %558 = vmatpush.bf16.msra.mxu0 %v1002_v20  ;;  %v1001_v24 = vld [vmem:[%s1357_s1 + $0x8] sm:$0xff]  ;;  %v1000_v28 = vld [vmem:[%s1357_s1] sm:$0xff]  ;;  %s1097_s8 = smov 64   ;;  %vm676_vm0 = vcmask 261120  }
  0x17   :  { %571 = vmatpush.bf16.msra.mxu1 %v1010_v21  ;;  %v1009_v25 = vld [vmem:[%s1357_s1 + $0x48] sm:$0xff]  ;;  %v1008_v29 = vld [vmem:[%s1357_s1 + $0x40] sm:$0xff]  ;;  %v1039_v32 = vld [vmem:[%s1357_s1 + $0x138] sm:$0xff] }
  0x18   :  { %584 = vmatpush.bf16.msra.mxu2 %v1018_v22  ;;  %v1017_v26 = vld [vmem:[%s1357_s1 + $0x88] sm:$0xff]  ;;  %v1016_v30 = vld [vmem:[%s1357_s1 + $0x80] sm:$0xff]  ;;  %v21_v33 = vld [vmem:[%s1356_s0 + $0x10] sm:$0xff] }
  0x19   :  { %597 = vmatpush.bf16.msra.mxu3 %v1026_v23  ;;  %v1025_v27 = vld [vmem:[%s1357_s1 + $0xc8] sm:$0xff]  ;;  %v1024_v31 = vld [vmem:[%s1357_s1 + $0xc0] sm:$0xff]  ;;  %v1047_v35 = vld [vmem:[%s1357_s1 + $0x178] sm:$0xff]  ;;  %v29_v40 = vpack.c.bf16 %v21_v33, %v21_v33 }
  0x1a   :  { %559 = vmatpush.bf16.msra.mxu0 %v1001_v24  ;;  %v19_v34 = vld [vmem:[%s1356_s0] sm:$0xff]  ;;  %v22_v36 = vld [vmem:[%s1356_s0 + $0x18] sm:$0xff]  ;;  %v20_v37 = vld [vmem:[%s1356_s0 + $0x8] sm:$0xff] }
  0x1b   :  { %572 = vmatpush.bf16.msra.mxu1 %v1009_v25  ;;  %v1055_v38 = vld [vmem:[%s1357_s1 + $0x1b8] sm:$0xff]  ;;  %v27_v41 = vpack.c.bf16 %v19_v34, %v19_v34  ;;  %v30_v42 = vpack.c.bf16 %v22_v36, %v22_v36  ;;  %v28_v43 = vpack.c.bf16 %v20_v37, %v20_v37  ;;  %v1038_v44 = vld [vmem:[%s1357_s1 + $0x130] sm:$0xff]  ;;  %v1259_v48 = vld [vmem:[%s1359_s3] ss:$0 sm:$0xff] }
  0x1c   :  { %585 = vmatpush.bf16.msra.mxu2 %v1017_v26  ;;  %v1063_v39 = vld [vmem:[%s1357_s1 + $0x1f8] sm:$0xff]  ;;  %v1046_v45 = vld [vmem:[%s1357_s1 + $0x170] sm:$0xff]  ;;  %v1037_v49 = vld [vmem:[%s1357_s1 + $0x128] sm:$0xff]  ;;  %550 = vrot.lane.b32.xlu0 %v1259_v48, %s1097_s8  ;;  %s726_s8 = sshll.u32 %s1360_s4, 4  ;;  %s727_s8 = int_to_ptr.hbm [resolvable:$true] %s726_s8 }
  0x1d   :  { %598 = vmatpush.bf16.msra.mxu3 %v1025_v27  ;;  %v1054_v46 = vld [vmem:[%s1357_s1 + $0x1b0] sm:$0xff]  ;;  %v1045_v50 = vld [vmem:[%s1357_s1 + $0x168] sm:$0xff]  ;;  %v1036_v53 = vld [vmem:[%s1357_s1 + $0x120] sm:$0xff] }
  0x1e   :  { %560 = vmatpush.bf16.msra.mxu0 %v1000_v28  ;;  %v1062_v47 = vld [vmem:[%s1357_s1 + $0x1f0] sm:$0xff]  ;;  %v1053_v51 = vld [vmem:[%s1357_s1 + $0x1a8] sm:$0xff]  ;;  %v1044_v54 = vld [vmem:[%s1357_s1 + $0x160] sm:$0xff] }
  0x1f   :  { %573 = vmatpush.bf16.msra.mxu1 %v1008_v29  ;;  %v1061_v52 = vld [vmem:[%s1357_s1 + $0x1e8] sm:$0xff]  ;;  %v1052_v55 = vld [vmem:[%s1357_s1 + $0x1a0] sm:$0xff]  ;;  %v1035_v57 = vld [vmem:[%s1357_s1 + $0x118] sm:$0xff] }
  0x20   :  { %586 = vmatpush.bf16.msra.mxu2 %v1016_v30  ;;  %v1060_v56 = vld [vmem:[%s1357_s1 + $0x1e0] sm:$0xff]  ;;  %v1043_v58 = vld [vmem:[%s1357_s1 + $0x158] sm:$0xff]  ;;  %v1034_v61 = vld [vmem:[%s1357_s1 + $0x110] sm:$0xff] }
  0x21   :  { %599 = vmatpush.bf16.msra.mxu3 %v1024_v31  ;;  %561 = vmatmul.bf16.vlgmr.msra.gmra.mxu0 %v27_v41  ;;  %v1051_v59 = vld [vmem:[%s1357_s1 + $0x198] sm:$0xff]  ;;  %v1042_v62 = vld [vmem:[%s1357_s1 + $0x150] sm:$0xff]  ;;  %v1033_v1 = vld [vmem:[%s1357_s1 + $0x108] sm:$0xff] }
  0x22   :  { %605 = vmatpush.bf16.msrb.mxu0 %v1039_v32  ;;  %574 = vmatmul.bf16.vlgmr.msra.gmra.mxu1 %v28_v43  ;;  %v1059_v60 = vld [vmem:[%s1357_s1 + $0x1d8] sm:$0xff]  ;;  %v1050_v63 = vld [vmem:[%s1357_s1 + $0x190] sm:$0xff]  ;;  %v1041_v2 = vld [vmem:[%s1357_s1 + $0x148] sm:$0xff] }
  0x23   :  { %618 = vmatpush.bf16.msrb.mxu1 %v1047_v35  ;;  %587 = vmatmul.bf16.vlgmr.msra.gmra.mxu2 %v29_v40  ;;  %v1058_v0 = vld [vmem:[%s1357_s1 + $0x1d0] sm:$0xff]  ;;  %v1049_v3 = vld [vmem:[%s1357_s1 + $0x188] sm:$0xff]  ;;  %v1032_v5 = vld [vmem:[%s1357_s1 + $0x100] sm:$0xff] }
  0x24   :  { %631 = vmatpush.bf16.msrb.mxu2 %v1055_v38  ;;  %600 = vmatmul.bf16.vlgmr.msra.gmra.mxu3 %v30_v42  ;;  %v1057_v4 = vld [vmem:[%s1357_s1 + $0x1c8] sm:$0xff]  ;;  %v1040_v6 = vld [vmem:[%s1357_s1 + $0x140] sm:$0xff]  ;;  %v25_v11 = vld [vmem:[%s1356_s0 + $0x30] sm:$0xff] }
  0x25   :  { %644 = vmatpush.bf16.msrb.mxu3 %v1063_v39  ;;  %v1048_v7 = vld [vmem:[%s1357_s1 + $0x180] sm:$0xff]  ;;  %v24_v9 = vld [vmem:[%s1356_s0 + $0x28] sm:$0xff]  ;;  %v26_v12 = vld [vmem:[%s1356_s0 + $0x38] sm:$0xff]  ;;  %v33_v15 = vpack.c.bf16 %v25_v11, %v25_v11 }
  0x26   :  { %606 = vmatpush.bf16.msrb.mxu0 %v1038_v44  ;;  %v23_v8 = vld [vmem:[%s1356_s0 + $0x20] sm:$0xff]  ;;  %v32_v14 = vpack.c.bf16 %v24_v9, %v24_v9  ;;  %v34_v16 = vpack.c.bf16 %v26_v12, %v26_v12  ;;  %v1065_v18 = vld [vmem:[%s1358_s2 + $0x8] sm:$0xff] }
  0x27   :  { %619 = vmatpush.bf16.msrb.mxu1 %v1046_v45  ;;  %v1056_v10 = vld [vmem:[%s1357_s1 + $0x1c0] sm:$0xff]  ;;  %v31_v13 = vpack.c.bf16 %v23_v8, %v23_v8 }
  0x28   :  { %632 = vmatpush.bf16.msrb.mxu2 %v1054_v46  ;;  %v1064_v24 = vld [vmem:[%s1358_s2] sm:$0xff]  ;;  %v693_v46 = vlaneseq  ;;  %s1098_s2 = smov [#allocation2]  }
  0x29   :  { %645 = vmatpush.bf16.msrb.mxu3 %v1062_v47  ;;  %s724_s6 = sshll.u32 %s1098_s2, 4  ;;  %s725_s6 = int_to_ptr.vmem [resolvable:$true] %s724_s6 }
  0x2a   :  { %607 = vmatpush.bf16.msrb.mxu0 %v1037_v49  ;;  %v694_v47 = vand.u32 127, %v693_v46 }
  0x2b   :  { %620 = vmatpush.bf16.msrb.mxu1 %v1045_v50 }
  0x2c   :  { %633 = vmatpush.bf16.msrb.mxu2 %v1053_v51  ;;  %vm695_vm1 = vcmp.lt.s32.totalorder %v694_v47, 8  ;;  %vm715_vm4 = vcmp.eq.s32.totalorder %v694_v47, 9 }
  0x2d   :  { %646 = vmatpush.bf16.msrb.mxu3 %v1061_v52 }
  0x2e   :  { %608 = vmatpush.bf16.msrb.mxu0 %v1036_v53 }
  0x2f   :  { %621 = vmatpush.bf16.msrb.mxu1 %v1044_v54 }
  0x30   :  { %634 = vmatpush.bf16.msrb.mxu2 %v1052_v55 }
  0x31   :  { %647 = vmatpush.bf16.msrb.mxu3 %v1060_v56 }
  0x32   :  { %609 = vmatpush.bf16.msrb.mxu0 %v1035_v57 }
  0x33   :  { %622 = vmatpush.bf16.msrb.mxu1 %v1043_v58 }
  0x34   :  { %635 = vmatpush.bf16.msrb.mxu2 %v1051_v59 }
  0x35   :  { %648 = vmatpush.bf16.msrb.mxu3 %v1059_v60 }
  0x36   :  { %610 = vmatpush.bf16.msrb.mxu0 %v1034_v61 }
  0x37   :  { %623 = vmatpush.bf16.msrb.mxu1 %v1042_v62 }
  0x38   :  { %636 = vmatpush.bf16.msrb.mxu2 %v1050_v63 }
  0x39   :  { %649 = vmatpush.bf16.msrb.mxu3 %v1058_v0 }
  0x3a   :  { %611 = vmatpush.bf16.msrb.mxu0 %v1033_v1 }
  0x3b   :  { %624 = vmatpush.bf16.msrb.mxu1 %v1041_v2 }
  0x3c   :  { %637 = vmatpush.bf16.msrb.mxu2 %v1049_v3 }
  0x3d   :  { %650 = vmatpush.bf16.msrb.mxu3 %v1057_v4 }
  0x3e   :  { %612 = vmatpush.bf16.msrb.mxu0 %v1032_v5 }
  0x3f   :  { %625 = vmatpush.bf16.msrb.mxu1 %v1040_v6 }
  0x40   :  { %638 = vmatpush.bf16.msrb.mxu2 %v1048_v7 }
  0x41   :  { %651 = vmatpush.bf16.msrb.mxu3 %v1056_v10  ;;  %613 = vmatmul.bf16.vlgmr.msrb.gmra.mxu0 %v31_v13 }
  0x42   :  { %626 = vmatmul.bf16.vlgmr.msrb.gmra.mxu1 %v32_v14  ;;  %686 = vmatpush.bf16.msra.mxu0 %v1065_v18 }
  0x43   :  { %639 = vmatmul.bf16.vlgmr.msrb.gmra.mxu2 %v33_v15 }
  0x44   :  { %652 = vmatmul.bf16.vlgmr.msrb.gmra.mxu3 %v34_v16 }
  0x46   :  { %687 = vmatpush.bf16.msra.mxu0 %v1064_v24 }
  0x8e   :  { %v551_v25 = vpop.permute.xlu0 %550 }
  0x9e   :  { %v562_v17 = vpop.f32.mrf.mxu0 }
  0x9f   :  { %v575_v19 = vpop.f32.mrf.mxu1  ;;  %v563_v28 = vadd.f32 %v562_v17, %v551_v25 }
  0xa1   :  { %v576_v29 = vadd.f32 %v575_v19, %v563_v28 }
  0xa6   :  { %v588_v20 = vpop.f32.mrf.mxu2  ;;  %v564_v22 = vpop.f32.mrf.mxu0 }
  0xa7   :  { %v601_v21 = vpop.f32.mrf.mxu3  ;;  %v577_v23 = vpop.f32.mrf.mxu1  ;;  %v589_v30 = vadd.f32 %v588_v20, %v576_v29 }
  0xa9   :  { %v602_v31 = vadd.f32 %v601_v21, %v589_v30 }
  0xae   :  { %v590_v26 = vpop.f32.mrf.mxu2 }
  0xaf   :  { %v603_v27 = vpop.f32.mrf.mxu3 }
  0xbe   :  { %v614_v32 = vpop.f32.mrf.mxu0 }
  0xbf   :  { %v627_v33 = vpop.f32.mrf.mxu1  ;;  %v615_v34 = vadd.f32 %v614_v32, %v602_v31 }
  0xc1   :  { %v628_v35 = vadd.f32 %v627_v33, %v615_v34 }
  0xc6   :  { %v640_v36 = vpop.f32.mrf.mxu2  ;;  %v616_v39 = vpop.f32.mrf.mxu0 }
  0xc7   :  { %v653_v37 = vpop.f32.mrf.mxu3  ;;  %v641_v38 = vadd.f32 %v640_v36, %v628_v35  ;;  %v629_v40 = vpop.f32.mrf.mxu1 }
  0xc9   :  { %v654_v41 = vadd.f32 %v653_v37, %v641_v38 }
  0xcb   :  { %1069 = vtanh.f32 %v654_v41 }
  0xce   :  { %v642_v42 = vpop.f32.mrf.mxu2 }
  0xcf   :  { %v655_v43 = vpop.f32.mrf.mxu3 }
  0xd1   :  { %v1070_v44 = vpop.eup %1069 }
  0xd2   :  { %v658_v45 = vpack.c.bf16 %v1070_v44, %v1070_v44 }
  0xd4   :  { %999 = vmatmul.msk.bf16.vlgmr.msra.gmra.mxu0 %vm676_vm0, %v658_v45 }
 0x151   :  { %v689_v49 = vpop.f32.mrf.mxu0 }
 0x152   :  { %v690_v50 = vadd.f32 %v1259_v48, %v689_v49 }
 0x154   :  { %v696_v51 = vsel %vm695_vm1, %v690_v50, -1e+30 }
 0x155   :  { %697 = vmax.xlane.f32.xlu0 %v696_v51 }
 0x159   :  { %v691_v52 = vpop.f32.mrf.mxu0 }
 0x1c8   :  { %v698_v53 = vpop.xlane.xlu0 %697 }
 0x1c9   :  { %vm699_vm2 = vcmp.eq.f32.partialorder %v696_v51, %v698_v53 }
 0x1ca   :  { %v700_v54 = vsel %vm699_vm2, %v694_v47, 128 }
 0x1cb   :  { %v702_v55 = vshra.s32 %v700_v54, 16  ;;  %v701_v57 = vand.u32 65535, %v700_v54 }
 0x1cd   :  { %v704_v56 = vcvt.s32.f32 %v702_v55  ;;  %v703_v59 = vcvt.s32.f32 %v701_v57 }
 0x1cf   :  { %705 = vmin.xlane.f32.xlu1 %v704_v56 }
 0x242   :  { %v706_v58 = vpop.xlane.xlu1 %705 }
 0x243   :  { %vm707_vm3 = vcmp.eq.f32.partialorder %v704_v56, %v706_v58  ;;  %v712_v61 = vcvt.f32.s32 %v706_v58 }
 0x244   :  { %v708_v60 = vsel %vm707_vm3, %v703_v59, inf }
 0x245   :  { %709 = vmin.xlane.f32.xlu1 %v708_v60  ;;  %v713_v63 = vshll.u32 %v712_v61, 16 }
 0x2b8   :  { %v710_v62 = vpop.xlane.xlu1 %709 }
 0x2b9   :  { %v711_v0 = vcvt.f32.s32 %v710_v62 }
 0x2bb   :  { %v714_v48 = vadd.s32 %v713_v63, %v711_v0 }
 0x2bd   :  { %v716_v1 = vcvt.s32.f32 %v714_v48 }
 0x2bf   :  { %v717_v2 = vsel %vm715_vm4, %v716_v1, %v690_v50 }
 0x2c0   :  { %718 = vst [vmem:[#allocation2] sm:$0xff] %v717_v2 }
 0x2c1   :  { %729 = dma.vmem_to_hbm [thread:$0]  %s725_s6, 128, %s727_s8, [#allocation3]  }
 0x2c2   :  { %1095 = dma.done.wait [#allocation3], 128  }
 0x2c3   :  { %1096 = vsyncadd [#allocation3], 4294967168 }
 0x2c4   :  { %734 = vsyncpa [#allocation3], 1 }

</bundles_post_ra>
